<compile_context>
chip_gen: v7x
topology: tpu7x:2x2x1
jax: 0.10.0
libtpu: 0.0.40
codegen_flags: <defaults>
</compile_context>

<pallas_src>
import functools

import jax
import jax.numpy as jnp
import numpy as np
from jax import lax
from jax.experimental import pallas as pl
from jax.experimental.pallas import tpu as pltpu


# ---------------------------------------------------------------------------
# Fused kernel: depthwise 3x3 conv -> (1x1 conv x graph) matmul, lane-dense out
# ---------------------------------------------------------------------------
def _stgcn_fused_kernel(x_ref, w1m_ref, wc_ref, bc_ref, o_ref):
    """One batch block (NB samples) per grid step.

    x_ref   : (NB*T, C_in*V)        input, rows = (n, t), lanes = (ci, v)
    w1m_ref : (9, NB*T, C_in*V)     pre-masked depthwise taps (tap = dt*3+dv)
    wc_ref  : (C_in*V, Cout*W)      combined (1x1 conv x A) weight
    bc_ref  : (1, Cout*W)           combined bias (b1, b2 folded through A/Wcomb)
    o_ref   : (NB*T, Cout*W)        lane-dense output block
    """
    x = x_ref[...]                                   # (NT, Kdim) f32
    nt, kdim = x.shape

    # Temporal halo rows: 2 XLU rolls total.  Wrap-around rows (t==0 / t==T-1,
    # including batch boundaries) are zeroed by the pre-masked tap weights.
    x_up = pltpu.roll(x, shift=1, axis=0)            # row r holds x[r-1]  (dt = 0)
    x_dn = pltpu.roll(x, shift=nt - 1, axis=0)       # row r holds x[r+1]  (dt = 2)

    # Depthwise 3x3 conv, fully vectorized over (ci, v) lanes and (n, t) rows.
    acc = jnp.zeros_like(x)
    for dt, base in enumerate((x_up, x, x_dn)):
        left = pltpu.roll(base, shift=1, axis=1)         # lane l holds base[l-1] (dv=0)
        right = pltpu.roll(base, shift=kdim - 1, axis=1)  # lane l holds base[l+1] (dv=2)
        for dv, tap in enumerate((left, base, right)):
            acc = acc + w1m_ref[dt * 3 + dv] * tap       # masked-weight FMA (VPU)

    # Fused 1x1-conv + graph contraction: one MXU matmul, lane-dense result.
    res = jnp.dot(acc, wc_ref[...], preferred_element_type=jnp.float32)
    o_ref[...] = res + bc_ref[...]                   # single unmasked 128-lane store


# ---------------------------------------------------------------------------
# Batch-block (matmul M tile) selection
# ---------------------------------------------------------------------------
def _pick_batch_block(n, t, kdim, cw, *, bytes_per=4,
                      vmem_budget=24 * 1024 * 1024, target_rows=256):
    """Largest divisor of n whose double-buffered (x, out) blocks fit the VMEM
    budget; stop once the matmul M dimension reaches `target_rows`."""
    nb = 1
    for d in range(1, n + 1):
        if n % d:
            continue
        if 2 * d * t * (kdim + cw) * bytes_per > vmem_budget:
            break
        nb = d
        if d * t >= target_rows:
            break
    return nb


# ---------------------------------------------------------------------------
# Wrapper: trace-time weight fusion + layout prep, single pallas_call
# ---------------------------------------------------------------------------
def spatial_separate_graph_convolution(x, A, params, s_kernel_size):
    w1, b1, w2, b2 = params["w1"], params["b1"], params["w2"], params["b2"]
    N, C, T, V = x.shape
    K = s_kernel_size
    O = w2.shape[0]                 # = out_channels * K
    Cout = O // K
    W = A.shape[-1]
    Kdim = C * V                    # matmul contraction dim, lanes ordered (ci, v)
    CW = Cout * W                   # lane-dense output dim, lanes ordered (c, w)

    nb = _pick_batch_block(N, T, Kdim, CW)
    NT = nb * T                     # matmul M rows per grid step

    # ---- trace-time algebraic fusion of conv2 with A (weights only, tiny) ----
    # Wcomb[ci*V+v, c*W+w] = sum_k w2[k*Cout+c, ci] * A[k, v, w]
    w2m = w2[:, :, 0, 0].reshape(K, Cout, C).astype(jnp.float32)      # [k, c, ci]
    wcomb = jnp.einsum("kcq,kvw->qvcw", w2m, A).reshape(Kdim, CW)
    # bias from b2 through A:  bias2[c*W+w] = sum_{k,v} b2[k*Cout+c] * A[k, v, w]
    b2m = b2.reshape(K, Cout).astype(jnp.float32)
    bias2 = jnp.einsum("kc,kvw->cw", b2m, A).reshape(1, CW)

    # ---- pre-masked depthwise taps (halo masks hoisted out of the kernel) ----
    w1_taps = w1[:, 0, :, :].reshape(C, 9).astype(jnp.float32)        # [ci, dt*3+dv]
    w1_lanes = jnp.repeat(w1_taps.T, V, axis=1)                       # (9, Kdim)
    t_row = jnp.arange(NT, dtype=jnp.int32) % T                       # per-sample t
    v_lane = jnp.arange(Kdim, dtype=jnp.int32) % V                    # per-channel v
    row_m = [(t_row >= 1).astype(jnp.float32),
             jnp.ones((NT,), jnp.float32),
             (t_row <= T - 2).astype(jnp.float32)]
    col_m = [(v_lane >= 1).astype(jnp.float32),
             jnp.ones((Kdim,), jnp.float32),
             (v_lane <= V - 2).astype(jnp.float32)]
    w1m = jnp.stack([
        w1_lanes[dt * 3 + dv][None, :] * row_m[dt][:, None] * col_m[dv][None, :]
        for dt in range(3) for dv in range(3)
    ])                                                                # (9, NT, Kdim)

    # ---- fold depthwise bias through the combined weight ---------------------
    b1_lanes = jnp.repeat(b1.astype(jnp.float32), V).reshape(1, Kdim)
    bias_total = bias2 + jnp.dot(b1_lanes, wcomb)                     # (1, CW)

    # ---- input in matmul-LHS layout: rows = (n, t), lanes = (ci, v) ----------
    # TODO(synk): at production shapes on v5e, produce this layout upstream (or
    # relayout in-kernel via pltpu.einshape) to avoid the extra HBM roundtrip.
    x_flat = jnp.transpose(x, (0, 2, 1, 3)).reshape(N * T, Kdim).astype(jnp.float32)

    flops = 2 * N * T * Kdim * CW + 2 * 9 * N * T * Kdim
    bytes_accessed = 4 * (N * T * Kdim + N * T * CW
                          + 9 * NT * Kdim + Kdim * CW + CW)

    out_flat = pl.pallas_call(
        _stgcn_fused_kernel,
        out_shape=jax.ShapeDtypeStruct((N * T, CW), jnp.float32),
        grid=(N // nb,),
        in_specs=[
            pl.BlockSpec((NT, Kdim), lambda n: (n, 0)),        # per-batch-block rows
            pl.BlockSpec((9, NT, Kdim), lambda n: (0, 0, 0)),  # resident masked taps
            pl.BlockSpec((Kdim, CW), lambda n: (0, 0)),        # resident fused weight
            pl.BlockSpec((1, CW), lambda n: (0, 0)),           # resident fused bias
        ],
        out_specs=pl.BlockSpec((NT, CW), lambda n: (n, 0)),    # lane-dense output
        compiler_params=pltpu.CompilerParams(
            dimension_semantics=("parallel",),
            vmem_limit_bytes=32 * 1024 * 1024,
        ),
        cost_estimate=pl.CostEstimate(
            flops=flops, transcendentals=0, bytes_accessed=bytes_accessed),
    )(x_flat, w1m, wcomb, bias_total)

    # (rows=(n,t), lanes=(c,w)) -> PyTorch (N, Cout, T, W); cheap wrapper relayout.
    return out_flat.reshape(N, T, Cout, W).transpose(0, 2, 1, 3)


# ---------------------------------------------------------------------------
# Pure-JAX reference (correctness check only)
# ---------------------------------------------------------------------------
def reference(x, A, params, K):
    w1, b1, w2, b2 = params["w1"], params["b1"], params["w2"], params["b2"]
    y = lax.conv_general_dilated(
        x, w1, (1, 1), ((1, 1), (1, 1)),
        dimension_numbers=("NCHW", "OIHW", "NCHW"),
        feature_group_count=x.shape[1])
    y = y + b1[None, :, None, None]
    y = lax.conv_general_dilated(
        y, w2, (1, 1), "VALID",
        dimension_numbers=("NCHW", "OIHW", "NCHW"))
    y = y + b2[None, :, None, None]
    n, kc, t, v = y.shape
    y = y.reshape(n, K, kc // K, t, v)
    return jnp.einsum("nkctv,kvw->nctw", y, A)


# ---------------------------------------------------------------------------
# Main
# ---------------------------------------------------------------------------
if __name__ == "__main__":
    N, C_in, C_out, K = 2, 4, 8, 3      # s_kernel_size = 3
    T, V = 8, 16                        # time steps, graph vertices
    O = C_out * K

    key = jax.random.PRNGKey(0)
    k1, k2, k3, k4, kx, ka = jax.random.split(key, 6)

    params = {
        "w1": 0.2 * jax.random.normal(k1, (C_in, 1, 3, 3), jnp.float32),  # depthwise
        "b1": 0.1 * jax.random.normal(k2, (C_in,), jnp.float32),
        "w2": 0.2 * jax.random.normal(k3, (O, C_in, 1, 1), jnp.float32),  # 1x1 conv
        "b2": 0.1 * jax.random.normal(k4, (O,), jnp.float32),
    }
    x = jax.random.normal(kx, (N, C_in, T, V), jnp.float32)
    A = 0.3 * jax.random.normal(ka, (K, V, V), jnp.float32)

    out = jax.block_until_ready(spatial_separate_graph_convolution(x, A, params, K))
    ref = jax.block_until_ready(reference(x, A, params, K))

    assert out.shape == (N, C_out, T, V), out.shape
    np.testing.assert_allclose(np.asarray(out), np.asarray(ref), rtol=2e-2, atol=2e-3)

    print("KERNEL_OK")
</pallas_src>

<mosaic_0001>
module attributes {stable_mosaic.version = 11 : i64} {
  func.func @_stgcn_fused_kernel(%arg0: i32, %arg1: memref<16x64xf32, #tpu.memory_space<vmem>>, %arg2: memref<9x16x64xf32, #tpu.memory_space<vmem>>, %arg3: memref<64x128xf32, #tpu.memory_space<vmem>>, %arg4: memref<1x128xf32, #tpu.memory_space<vmem>>, %arg5: memref<16x128xf32, #tpu.memory_space<vmem>>) attributes {dimension_semantics = [#tpu.dimension_semantics<parallel>], iteration_bounds = array<i64: 1>, scalar_prefetch = 0 : i64, scratch_operands = 0 : i64, tpu.core_type = #tpu.core_type<tc>, window_params = [{transform_indices = @transform_0, window_bounds = array<i64: 16, 64>}, {pipeline_mode = #tpu.pipeline_mode<synchronous>, transform_indices = @transform_1, window_bounds = array<i64: 9, 16, 64>}, {pipeline_mode = #tpu.pipeline_mode<synchronous>, transform_indices = @transform_2, window_bounds = array<i64: 64, 128>}, {pipeline_mode = #tpu.pipeline_mode<synchronous>, transform_indices = @transform_3, window_bounds = array<i64: 1, 128>}, {transform_indices = @transform_4, window_bounds = array<i64: 16, 128>}]} {
    %c0 = arith.constant 0 : index
    %c0_0 = arith.constant 0 : index
    %0 = vector.load %arg1[%c0, %c0_0] : memref<16x64xf32, #tpu.memory_space<vmem>>, vector<16x64xf32>
    %c1_i32 = arith.constant 1 : i32
    %1 = tpu.dynamic_rotate %0 by %c1_i32 dim 0 : vector<16x64xf32>, i32 -> vector<16x64xf32>
    %c15_i32 = arith.constant 15 : i32
    %2 = tpu.dynamic_rotate %0 by %c15_i32 dim 0 : vector<16x64xf32>, i32 -> vector<16x64xf32>
    %cst = arith.constant 0.000000e+00 : f32
    %3 = vector.broadcast %cst : f32 to vector<16x64xf32>
    %c1_i32_1 = arith.constant 1 : i32
    %4 = tpu.dynamic_rotate %1 by %c1_i32_1 dim 1 : vector<16x64xf32>, i32 -> vector<16x64xf32>
    %c63_i32 = arith.constant 63 : i32
    %5 = tpu.dynamic_rotate %1 by %c63_i32 dim 1 : vector<16x64xf32>, i32 -> vector<16x64xf32>
    %c0_2 = arith.constant 0 : index
    %c0_3 = arith.constant 0 : index
    %c0_4 = arith.constant 0 : index
    %6 = vector.load %arg2[%c0_2, %c0_3, %c0_4] : memref<9x16x64xf32, #tpu.memory_space<vmem>>, vector<1x16x64xf32>
    %7 = vector.shape_cast %6 : vector<1x16x64xf32> to vector<16x64xf32>
    %8 = arith.mulf %7, %4 : vector<16x64xf32>
    %9 = arith.addf %3, %8 : vector<16x64xf32>
    %c1 = arith.constant 1 : index
    %c0_5 = arith.constant 0 : index
    %c0_6 = arith.constant 0 : index
    %10 = vector.load %arg2[%c1, %c0_5, %c0_6] : memref<9x16x64xf32, #tpu.memory_space<vmem>>, vector<1x16x64xf32>
    %11 = vector.shape_cast %10 : vector<1x16x64xf32> to vector<16x64xf32>
    %12 = arith.mulf %11, %1 : vector<16x64xf32>
    %13 = arith.addf %9, %12 : vector<16x64xf32>
    %c2 = arith.constant 2 : index
    %c0_7 = arith.constant 0 : index
    %c0_8 = arith.constant 0 : index
    %14 = vector.load %arg2[%c2, %c0_7, %c0_8] : memref<9x16x64xf32, #tpu.memory_space<vmem>>, vector<1x16x64xf32>
    %15 = vector.shape_cast %14 : vector<1x16x64xf32> to vector<16x64xf32>
    %16 = arith.mulf %15, %5 : vector<16x64xf32>
    %17 = arith.addf %13, %16 : vector<16x64xf32>
    %c1_i32_9 = arith.constant 1 : i32
    %18 = tpu.dynamic_rotate %0 by %c1_i32_9 dim 1 : vector<16x64xf32>, i32 -> vector<16x64xf32>
    %c63_i32_10 = arith.constant 63 : i32
    %19 = tpu.dynamic_rotate %0 by %c63_i32_10 dim 1 : vector<16x64xf32>, i32 -> vector<16x64xf32>
    %c3 = arith.constant 3 : index
    %c0_11 = arith.constant 0 : index
    %c0_12 = arith.constant 0 : index
    %20 = vector.load %arg2[%c3, %c0_11, %c0_12] : memref<9x16x64xf32, #tpu.memory_space<vmem>>, vector<1x16x64xf32>
    %21 = vector.shape_cast %20 : vector<1x16x64xf32> to vector<16x64xf32>
    %22 = arith.mulf %21, %18 : vector<16x64xf32>
    %23 = arith.addf %17, %22 : vector<16x64xf32>
    %c4 = arith.constant 4 : index
    %c0_13 = arith.constant 0 : index
    %c0_14 = arith.constant 0 : index
    %24 = vector.load %arg2[%c4, %c0_13, %c0_14] : memref<9x16x64xf32, #tpu.memory_space<vmem>>, vector<1x16x64xf32>
    %25 = vector.shape_cast %24 : vector<1x16x64xf32> to vector<16x64xf32>
    %26 = arith.mulf %25, %0 : vector<16x64xf32>
    %27 = arith.addf %23, %26 : vector<16x64xf32>
    %c5 = arith.constant 5 : index
    %c0_15 = arith.constant 0 : index
    %c0_16 = arith.constant 0 : index
    %28 = vector.load %arg2[%c5, %c0_15, %c0_16] : memref<9x16x64xf32, #tpu.memory_space<vmem>>, vector<1x16x64xf32>
    %29 = vector.shape_cast %28 : vector<1x16x64xf32> to vector<16x64xf32>
    %30 = arith.mulf %29, %19 : vector<16x64xf32>
    %31 = arith.addf %27, %30 : vector<16x64xf32>
    %c1_i32_17 = arith.constant 1 : i32
    %32 = tpu.dynamic_rotate %2 by %c1_i32_17 dim 1 : vector<16x64xf32>, i32 -> vector<16x64xf32>
    %c63_i32_18 = arith.constant 63 : i32
    %33 = tpu.dynamic_rotate %2 by %c63_i32_18 dim 1 : vector<16x64xf32>, i32 -> vector<16x64xf32>
    %c6 = arith.constant 6 : index
    %c0_19 = arith.constant 0 : index
    %c0_20 = arith.constant 0 : index
    %34 = vector.load %arg2[%c6, %c0_19, %c0_20] : memref<9x16x64xf32, #tpu.memory_space<vmem>>, vector<1x16x64xf32>
    %35 = vector.shape_cast %34 : vector<1x16x64xf32> to vector<16x64xf32>
    %36 = arith.mulf %35, %32 : vector<16x64xf32>
    %37 = arith.addf %31, %36 : vector<16x64xf32>
    %c7 = arith.constant 7 : index
    %c0_21 = arith.constant 0 : index
    %c0_22 = arith.constant 0 : index
    %38 = vector.load %arg2[%c7, %c0_21, %c0_22] : memref<9x16x64xf32, #tpu.memory_space<vmem>>, vector<1x16x64xf32>
    %39 = vector.shape_cast %38 : vector<1x16x64xf32> to vector<16x64xf32>
    %40 = arith.mulf %39, %2 : vector<16x64xf32>
    %41 = arith.addf %37, %40 : vector<16x64xf32>
    %c8 = arith.constant 8 : index
    %c0_23 = arith.constant 0 : index
    %c0_24 = arith.constant 0 : index
    %42 = vector.load %arg2[%c8, %c0_23, %c0_24] : memref<9x16x64xf32, #tpu.memory_space<vmem>>, vector<1x16x64xf32>
    %43 = vector.shape_cast %42 : vector<1x16x64xf32> to vector<16x64xf32>
    %44 = arith.mulf %43, %33 : vector<16x64xf32>
    %45 = arith.addf %41, %44 : vector<16x64xf32>
    %c0_25 = arith.constant 0 : index
    %c0_26 = arith.constant 0 : index
    %46 = vector.load %arg3[%c0_25, %c0_26] : memref<64x128xf32, #tpu.memory_space<vmem>>, vector<64x128xf32>
    %cst_27 = arith.constant dense<0.000000e+00> : vector<16x128xf32>
    %47 = tpu.matmul %45, %46, %cst_27 {dimension_numbers = #tpu.dot_dimension_numbers<[1], [0], [0], [1], [0, 0, 1, 1], [], []>} : vector<16x64xf32>, vector<64x128xf32>, vector<16x128xf32> -> vector<16x128xf32>
    %c0_28 = arith.constant 0 : index
    %c0_29 = arith.constant 0 : index
    %48 = vector.load %arg4[%c0_28, %c0_29] : memref<1x128xf32, #tpu.memory_space<vmem>>, vector<1x128xf32>
    %49 = vector.broadcast %48 : vector<1x128xf32> to vector<16x128xf32>
    %50 = arith.addf %47, %49 : vector<16x128xf32>
    %c0_30 = arith.constant 0 : index
    %c0_31 = arith.constant 0 : index
    %51 = vector.load %arg5[%c0_30, %c0_31] : memref<16x128xf32, #tpu.memory_space<vmem>>, vector<16x128xf32>
    tpu.vector_store %arg5[%c0_30, %c0_31], %50 {strides = array<i32>} : memref<16x128xf32, #tpu.memory_space<vmem>>, vector<16x128xf32>,
    return
  }
  func.func @transform_0(%arg0: i32) -> (i32, i32) {
    %c0_i32 = arith.constant 0 : i32
    %c0_i32_0 = arith.constant 0 : i32
    return %arg0, %c0_i32 : i32, i32
  }
  func.func @transform_1(%arg0: i32) -> (i32, i32, i32) {
    %c0_i32 = arith.constant 0 : i32
    %c0_i32_0 = arith.constant 0 : i32
    %c0_i32_1 = arith.constant 0 : i32
    %c0_i32_2 = arith.constant 0 : i32
    return %c0_i32, %c0_i32_0, %c0_i32_1 : i32, i32, i32
  }
  func.func @transform_2(%arg0: i32) -> (i32, i32) {
    %c0_i32 = arith.constant 0 : i32
    %c0_i32_0 = arith.constant 0 : i32
    %c0_i32_1 = arith.constant 0 : i32
    return %c0_i32, %c0_i32_0 : i32, i32
  }
  func.func @transform_3(%arg0: i32) -> (i32, i32) {
    %c0_i32 = arith.constant 0 : i32
    %c0_i32_0 = arith.constant 0 : i32
    %c0_i32_1 = arith.constant 0 : i32
    return %c0_i32, %c0_i32_0 : i32, i32
  }
  func.func @transform_4(%arg0: i32) -> (i32, i32) {
    %c0_i32 = arith.constant 0 : i32
    %c0_i32_0 = arith.constant 0 : i32
    return %arg0, %c0_i32 : i32, i32
  }
}

</mosaic_0001>

<bundles_post_ra>
// kernel: tpu_custom_call.1
= control target key start
LH: loop header
LB: loop body
LE: loop exit
PB: predicated region body
PF: predicated region fallthrough
CT: control target
= control target key end

     0   :  { %9 = vsyncpa [#allocation3], 0  ;;  %s656_s0 = inlined_call_operand.hbm [shape: f32[16,64], index: 0, kind: input, shape index: {}]   ;;  %s657_s1 = inlined_call_operand.hbm [shape: f32[9,16,64], index: 1, kind: input, shape index: {}]   ;;  %s658_s2 = inlined_call_operand.hbm [shape: f32[64,128], index: 2, kind: input, shape index: {}]   ;;  %s659_s3 = inlined_call_operand.vmem [shape: f32[1,128], index: 3, kind: input, shape index: {}]   ;;  %s660_s4 = inlined_call_operand.hbm [shape: f32[16,128], index: 4, kind: output, shape index: {}]  }
   0x1   :  { %10 = vsyncpa [#allocation6], 0 }
   0x2   :  { %11 = vsyncpa [#allocation4], 0  ;;  %s482_s15 = smov [#allocation5]   ;;  %s483_s17 = smov [#allocation2]  }
   0x3   :  { %s29_s16 = sshll.u32 %s482_s15, 4  ;;  %s17_s18 = sshll.u32 %s483_s17, 4  ;;  %s30_s16 = int_to_ptr.vmem [resolvable:$true] %s29_s16  ;;  %s516_s18 = int_to_ptr.vmem [resolvable:$true] %s17_s18 }
   0x4   :  { %s388_s21 = scalar_lea.hbm %s657_s1, 2304 }
   0x5   :  { %p389_p0 = scmp.ne.s32.totalorder %s657_s1, %s388_s21  ;;  %p392_p1 = scmp.lt.u32.totalorder %s388_s21, %s657_s1 }
   0x7   :  { %p394_p2 = pnand %p392_p1, %p389_p0 }
   0x9   :  { %397 = shalt.err (!%p394_p2)
}
   0xa   :  { %s398_s26 = scalar_lea.vmem %s30_s16, 2304  ;;  %p403_p4 = scmp.lt.s32.totalorder %s30_s16, %s30_s16 }
   0xb   :  { %p399_p3 = scmp.ne.s32.totalorder %s30_s16, %s398_s26  ;;  %p404_p5 = scmp.lt.s32.totalorder %s398_s26, %s398_s26 }
   0xd   :  { %p405_p6 = por %p404_p5, %p403_p4 }
   0xf   :  { %p406_p7 = pnand %p405_p6, %p399_p3 }
  0x11   :  { %409 = shalt.err (!%p406_p7)
}
  0x12   :  { %s484_s27 = smov 128   ;;  %s485_s28 = smov 8  }
  0x13   :  { %35 = dma.hbm_to_vmem [thread:$0]  %s657_s1, 2304, %s30_s16, [#allocation6], %s484_s27, %s484_s27, %s485_s28  }
  0x14   :  { %s410_s7 = scalar_lea.hbm %s656_s0, 256 }
  0x15   :  { %p411_p8 = scmp.ne.s32.totalorder %s656_s0, %s410_s7  ;;  %p414_p9 = scmp.lt.u32.totalorder %s410_s7, %s656_s0 }
  0x17   :  { %p416_p10 = pnand %p414_p9, %p411_p8 }
  0x19   :  { %419 = shalt.err (!%p416_p10)
}
  0x1a   :  { %s420_s12 = scalar_lea.vmem %s516_s18, 256  ;;  %p425_p12 = scmp.lt.s32.totalorder %s516_s18, %s516_s18 }
  0x1b   :  { %p421_p11 = scmp.ne.s32.totalorder %s516_s18, %s420_s12  ;;  %p426_p13 = scmp.lt.s32.totalorder %s420_s12, %s420_s12 }
  0x1d   :  { %p427_p0 = por %p426_p13, %p425_p12 }
  0x1f   :  { %p428_p1 = pnand %p427_p0, %p421_p11 }
  0x21   :  { %431 = shalt.err (!%p428_p1)
}
  0x22   :  { %23 = dma.hbm_to_vmem [thread:$0]  %s656_s0, 256, %s516_s18, [#allocation3], %s484_s27, %s484_s27, %s485_s28  }
  0x23   :  { %s486_s14 = smov [#allocation7]   ;;  %s432_s19 = scalar_lea.hbm %s658_s2, 1024 }
  0x24   :  { %s41_s15 = sshll.u32 %s486_s14, 4  ;;  %p433_p2 = scmp.ne.s32.totalorder %s658_s2, %s432_s19  ;;  %s42_s15 = int_to_ptr.vmem [resolvable:$true] %s41_s15 }
  0x25   :  { %p436_p3 = scmp.lt.u32.totalorder %s432_s19, %s658_s2 }
  0x27   :  { %p438_p4 = pnand %p436_p3, %p433_p2 }
  0x29   :  { %441 = shalt.err (!%p438_p4)
}
  0x2a   :  { %s442_s24 = scalar_lea.vmem %s42_s15, 1024  ;;  %p447_p6 = scmp.lt.s32.totalorder %s42_s15, %s42_s15 }
  0x2b   :  { %p443_p5 = scmp.ne.s32.totalorder %s42_s15, %s442_s24  ;;  %p448_p7 = scmp.lt.s32.totalorder %s442_s24, %s442_s24 }
  0x2d   :  { %p449_p8 = por %p448_p7, %p447_p6 }
  0x2f   :  { %p450_p9 = pnand %p449_p8, %p443_p5 }
  0x31   :  { %453 = shalt.err (!%p450_p9)
}
  0x32   :  { %47 = dma.hbm_to_vmem [thread:$0]  %s658_s2, 1024, %s42_s15, [#allocation6], %s484_s27, %s484_s27, %s485_s28  }
  0x33   :  { %476 = dma.done.wait [#allocation3], 256  }
  0x34   :  { %477 = vsyncadd [#allocation3], 4294967040 }
  0x35   :  { %478 = dma.done.wait [#allocation6], 3328  }
  0x36   :  { %479 = vsyncadd [#allocation6], 4294963968  ;;  %v63_v0 = vlaneseq  ;;  %v568_v2 = vld [vmem:[#allocation2] sm:$0xff]  ;;  %v570_v3 = vld [vmem:[#allocation2 + $0x8] sm:$0xff]  ;;  %s487_s25 = smov 64   ;;  %vm73_vm2 = vcmask 1048064  }
  0x37   :  { %v61_v4 = vrot.slane %v568_v2, 7  ;;  %v62_v5 = vrot.slane %v570_v3, 7  ;;  %120 = vrot.lane.b32.xlu1 %v568_v2, %s487_s25  ;;  %v68_v7 = vrot.slane %v568_v2, 1  ;;  %v69_v8 = vrot.slane %v570_v3, 1  ;;  %v214_v25 = vld [vmem:[#allocation7] sm:$0xff]  ;;  %v215_v26 = vld [vmem:[#allocation7 + $0x8] sm:$0xff] }
  0x38   :  { %v64_v1 = vshrl.u32 %v63_v0, 7  ;;  %v363_v27 = vpack.c.bf16 %v215_v26, %v214_v25  ;;  %s488_s2 = smov 65   ;;  %v216_v31 = vld [vmem:[#allocation7 + $0x10] sm:$0xff]  ;;  %v217_v32 = vld [vmem:[#allocation7 + $0x18] sm:$0xff]  ;;  %v218_v37 = vld [vmem:[#allocation7 + $0x20] sm:$0xff]  ;;  %s489_s26 = smov 127  }
  0x39   :  { %v367_v33 = vpack.c.bf16 %v217_v32, %v216_v31  ;;  %v219_v38 = vld [vmem:[#allocation7 + $0x28] sm:$0xff]  ;;  %v220_v41 = vld [vmem:[#allocation7 + $0x30] sm:$0xff]  ;;  %v221_v42 = vld [vmem:[#allocation7 + $0x38] sm:$0xff]  ;;  %vm229_vm3 = vcmask 523264   ;;  %s490_s5 = smov [#allocation8]  }
  0x3a   :  { %vm65_vm0 = vcmp.lt.s32.totalorder %v64_v1, 1  ;;  %vm70_vm1 = vcmp.lt.s32.totalorder %v64_v1, 7  ;;  %364 = vmatprep.subr.bf16.mxu0 %v363_v27  ;;  %v371_v39 = vpack.c.bf16 %v219_v38, %v218_v37  ;;  %v375_v43 = vpack.c.bf16 %v221_v42, %v220_v41  ;;  %v86_v49 = vld [vmem:[#allocation5] sm:$0xff]  ;;  %v101_v50 = vld [vmem:[#allocation5 + $0x10] sm:$0xff]  ;;  %v87_v55 = vld [vmem:[#allocation5 + $0x8] sm:$0xff]  ;;  %s318_s6 = sshll.u32 %s490_s5, 4  ;;  %s319_s6 = int_to_ptr.vmem [resolvable:$true] %s318_s6 }
  0x3b   :  { %v576_v6 = vsel %vm65_vm0, %v62_v5, %v61_v4  ;;  %v582_v9 = vsel %vm65_vm0, %v61_v4, %v62_v5  ;;  %123 = vrot.lane.b32.xlu1 %v570_v3, %s487_s25  ;;  %v586_v10 = vsel %vm70_vm1, %v69_v8, %v68_v7  ;;  %v590_v11 = vsel %vm70_vm1, %v68_v7, %v69_v8  ;;  %v102_v56 = vld [vmem:[#allocation5 + $0x18] sm:$0xff]  ;;  %v108_v57 = vld [vmem:[#allocation5 + $0x20] sm:$0xff]  ;;  %v133_v58 = vld [vmem:[#allocation5 + $0x30] sm:$0xff]  ;;  %s454_s7 = scalar_lea.vmem %s319_s6, 256  ;;  %p459_p11 = scmp.lt.s32.totalorder %s319_s6, %s319_s6 }
  0x3c   :  { %74 = vrot.lane.b32.xlu0 %v576_v6, %s487_s25  ;;  %366 = vmatpush3.bf16.msra.mxu0 %v363_v27  ;;  %v103_v53 = vmul.f32 %v101_v50, %v576_v6  ;;  %v148_v61 = vld [vmem:[#allocation5 + $0x40] sm:$0xff]  ;;  %v104_v0 = vmul.f32 %v102_v56, %v582_v9  ;;  %v109_v4 = vld [vmem:[#allocation5 + $0x28] sm:$0xff]  ;;  %v156_v25 = vld [vmem:[#allocation5 + $0x58] sm:$0xff]  ;;  %p455_p10 = scmp.ne.s32.totalorder %s319_s6, %s454_s7  ;;  %p460_p12 = scmp.lt.s32.totalorder %s454_s7, %s454_s7 }
  0x3d   :  { %368 = vmatprep.subr.bf16.mxu0 %v367_v33  ;;  %v150_v8 = vmul.f32 %v148_v61, %v568_v2  ;;  %v181_v32 = vld [vmem:[#allocation5 + $0x68] sm:$0xff] }
  0x3e   :  { %p461_p13 = por %p460_p12, %p459_p11 }
  0x3f   :  { %170 = vrot.lane.b32.xlu1 %v586_v10, %s487_s25 }
  0x40   :  { %77 = vrot.lane.b32.xlu0 %v582_v9, %s487_s25  ;;  %370 = vmatpush3.bf16.msra.mxu0 %v367_v33  ;;  %v202_v33 = vld [vmem:[#allocation5 + $0x80] sm:$0xff]  ;;  %p462_p0 = pnand %p461_p13, %p455_p10 }
  0x41   :  { %372 = vmatprep.subr.bf16.mxu0 %v371_v39 }
  0x44   :  { %167 = vrot.lane.b32.xlu0 %v590_v11, %s487_s25  ;;  %374 = vmatpush3.bf16.msra.mxu0 %v371_v39 }
  0x45   :  { %376 = vmatprep.subr.bf16.mxu0 %v375_v43 }
  0x48   :  { %378 = vmatpush3.bf16.msra.mxu0 %v375_v43  ;;  %v203_v43 = vld [vmem:[#allocation5 + $0x88] sm:$0xff] }
  0xa9   :  { %v121_v12 = vpop.permute.xlu1 %120 }
  0xaa   :  { %v122_v15 = vsel %vm73_vm2, %v121_v12, %v568_v2  ;;  %v149_v12 = vld [vmem:[#allocation5 + $0x48] sm:$0xff] }
  0xad   :  { %v124_v17 = vpop.permute.xlu1 %123 }
  0xae   :  { %v75_v13 = vpop.permute.xlu0 %74  ;;  %v125_v19 = vsel %vm73_vm2, %v124_v17, %v570_v3 }
  0xaf   :  { %v76_v14 = vsel %vm73_vm2, %v75_v13, %v576_v6 }
  0xb0   :  { %80 = vrot.lane.b32.xlu0 %v76_v14, %s487_s25  ;;  %v155_v14 = vld [vmem:[#allocation5 + $0x50] sm:$0xff] }
  0xb1   :  { %v171_v21 = vpop.permute.xlu1 %170 }
  0xb2   :  { %v78_v16 = vpop.permute.xlu0 %77  ;;  %v172_v23 = vsel %vm73_vm2, %v171_v21, %v586_v10  ;;  %v195_v21 = vld [vmem:[#allocation5 + $0x70] sm:$0xff] }
  0xb3   :  { %v79_v18 = vsel %vm73_vm2, %v78_v16, %v582_v9  ;;  %v197_v31 = vmul.f32 %v195_v21, %v590_v11 }
  0xb4   :  { %126 = vrot.lane.b32.xlu0 %v122_v15, %s487_s25  ;;  %82 = vrot.lane.b32.xlu1 %v79_v18, %s487_s25 }
  0xb6   :  { %v168_v20 = vpop.permute.xlu0 %167 }
  0xb7   :  { %v169_v22 = vsel %vm73_vm2, %v168_v20, %v590_v11  ;;  %v180_v20 = vld [vmem:[#allocation5 + $0x60] sm:$0xff] }
  0xb8   :  { %128 = vrot.lane.b32.xlu1 %v125_v19, %s487_s25  ;;  %173 = vrot.lane.b32.xlu0 %v169_v22, %s487_s25  ;;  %v151_v19 = vmul.f32 %v149_v12, %v570_v3 }
  0xbc   :  { %175 = vrot.lane.b32.xlu1 %v172_v23, %s487_s25 }
 0x122   :  { %v81_v24 = vpop.permute.xlu0 %80 }
 0x123   :  { %v84_v36 = vsel %vm73_vm2, %v81_v24, %v576_v6  ;;  %v134_v6 = vld [vmem:[#allocation5 + $0x38] sm:$0xff] }
 0x126   :  { %v83_v28 = vpop.permute.xlu1 %82  ;;  %v127_v29 = vpop.permute.xlu0 %126 }
 0x127   :  { %v130_v30 = vsel %vm73_vm2, %v127_v29, %v568_v2  ;;  %v85_v40 = vsel %vm73_vm2, %v83_v28, %v582_v9 }
 0x128   :  { %137 = vrot.lane.b32.xlu0 %v130_v30, %s488_s2 }
 0x12a   :  { %v129_v34 = vpop.permute.xlu1 %128  ;;  %v174_v44 = vpop.permute.xlu0 %173 }
 0x12b   :  { %v131_v35 = vsel %vm73_vm2, %v129_v34, %v570_v3  ;;  %v177_v45 = vsel %vm73_vm2, %v174_v44, %v590_v11 }
 0x12c   :  { %139 = vrot.lane.b32.xlu1 %v131_v35, %s488_s2  ;;  %90 = vrot.lane.b32.xlu0 %v84_v36, %s488_s2 }
 0x12e   :  { %v176_v46 = vpop.permute.xlu1 %175 }
 0x12f   :  { %v178_v47 = vsel %vm73_vm2, %v176_v46, %v586_v10 }
 0x130   :  { %92 = vrot.lane.b32.xlu1 %v85_v40, %s488_s2  ;;  %110 = vrot.lane.b32.xlu0 %v84_v36, %s489_s26 }
 0x134   :  { %112 = vrot.lane.b32.xlu1 %v85_v40, %s489_s26  ;;  %157 = vrot.lane.b32.xlu0 %v130_v30, %s489_s26  ;;  %v196_v30 = vld [vmem:[#allocation5 + $0x78] sm:$0xff] }
 0x135   :  { %v198_v38 = vmul.f32 %v196_v30, %v586_v10 }
 0x138   :  { %159 = vrot.lane.b32.xlu1 %v131_v35, %s489_s26  ;;  %184 = vrot.lane.b32.xlu0 %v177_v45, %s488_s2 }
 0x13c   :  { %186 = vrot.lane.b32.xlu1 %v178_v47, %s488_s2  ;;  %204 = vrot.lane.b32.xlu0 %v177_v45, %s489_s26 }
 0x140   :  { %206 = vrot.lane.b32.xlu1 %v178_v47, %s489_s26 }
 0x19a   :  { %v138_v48 = vpop.permute.xlu0 %137 }
 0x19b   :  { %v143_v5 = vmul.f32 %v138_v48, %v133_v58 }
 0x19e   :  { %v140_v51 = vpop.permute.xlu1 %139  ;;  %v91_v52 = vpop.permute.xlu0 %90 }
 0x19f   :  { %v96_v54 = vmul.f32 %v91_v52, %v86_v49  ;;  %v144_v22 = vmul.f32 %v140_v51, %v134_v6  ;;  %v331_v49 = vld [vmem:[%s659_s3] ss:$0 sm:$0xff] }
 0x1a1   :  { %v105_v62 = vadd.f32 %v103_v53, %v96_v54 }
 0x1a2   :  { %v93_v59 = vpop.permute.xlu1 %92  ;;  %v111_v60 = vpop.permute.xlu0 %110 }
 0x1a3   :  { %v97_v63 = vmul.f32 %v93_v59, %v87_v55  ;;  %v116_v1 = vmul.f32 %v111_v60, %v108_v57 }
 0x1a5   :  { %v118_v7 = vadd.f32 %v116_v1, %v105_v62  ;;  %v106_v16 = vadd.f32 %v104_v0, %v97_v63 }
 0x1a6   :  { %v113_v13 = vpop.permute.xlu1 %112  ;;  %v158_v15 = vpop.permute.xlu0 %157 }
 0x1a7   :  { %v145_v17 = vadd.f32 %v143_v5, %v118_v7  ;;  %v117_v18 = vmul.f32 %v113_v13, %v109_v4  ;;  %v163_v24 = vmul.f32 %v158_v15, %v155_v14 }
 0x1a9   :  { %v119_v9 = vadd.f32 %v117_v18, %v106_v16  ;;  %v152_v23 = vadd.f32 %v150_v8, %v145_v17 }
 0x1aa   :  { %v160_v26 = vpop.permute.xlu1 %159  ;;  %v185_v27 = vpop.permute.xlu0 %184 }
 0x1ab   :  { %v146_v2 = vadd.f32 %v144_v22, %v119_v9  ;;  %v165_v28 = vadd.f32 %v163_v24, %v152_v23  ;;  %v190_v29 = vmul.f32 %v185_v27, %v180_v20  ;;  %v164_v35 = vmul.f32 %v160_v26, %v156_v25 }
 0x1ad   :  { %v153_v34 = vadd.f32 %v151_v19, %v146_v2  ;;  %v192_v3 = vadd.f32 %v190_v29, %v165_v28 }
 0x1ae   :  { %v187_v36 = vpop.permute.xlu1 %186  ;;  %v205_v37 = vpop.permute.xlu0 %204 }
 0x1af   :  { %v166_v39 = vadd.f32 %v164_v35, %v153_v34  ;;  %v191_v40 = vmul.f32 %v187_v36, %v181_v32  ;;  %v210_v41 = vmul.f32 %v205_v37, %v202_v33  ;;  %v199_v42 = vadd.f32 %v197_v31, %v192_v3 }
 0x1b1   :  { %v193_v44 = vadd.f32 %v191_v40, %v166_v39  ;;  %v212_v45 = vadd.f32 %v210_v41, %v199_v42 }
 0x1b2   :  { %v207_v46 = vpop.permute.xlu1 %206 }
 0x1b3   :  { %v200_v47 = vadd.f32 %v198_v38, %v193_v44  ;;  %v211_v11 = vmul.f32 %v207_v46, %v203_v43  ;;  %360 = vmatprep.mubr.msk.f32.mxu0 %vm229_vm3, %v212_v45 }
 0x1b5   :  { %v213_v48 = vadd.f32 %v211_v11, %v200_v47 }
 0x1b7   :  { %361 = vmatmul.mubr.msk.f32.vlgmr.msra.gmra.mrb[0].mxu0 %vm229_vm3, %v213_v48 }
 0x28a   :  { %v362_v10 = vpop.f32.mrb[0].mxu0 }
 0x28b   :  { %v308_v50 = vadd.f32 %v362_v10, %v331_v49  ;;  %v302_v51 = vpop.f32.mrb[1].mxu0 }
 0x28c   :  { %v303_v52 = vadd.f32 %v331_v49, %v302_v51 }
 0x28d   :  { %312 = vst [vmem:[#allocation8 + $0x8] sm:$0xff] %v308_v50 }
 0x28e   :  { %311 = vst [vmem:[#allocation8] sm:$0xff] %v303_v52 }
 0x28f   :  { %465 = shalt.err (!%p462_p0)
}
 0x290   :  { %s466_s3 = scalar_lea.hbm %s660_s4, 256 }
 0x291   :  { %p467_p1 = scmp.ne.s32.totalorder %s660_s4, %s466_s3  ;;  %p470_p2 = scmp.lt.u32.totalorder %s466_s3, %s660_s4 }
 0x293   :  { %p472_p3 = pnand %p470_p2, %p467_p1 }
 0x295   :  { %475 = shalt.err (!%p472_p3)
}
 0x296   :  { %324 = dma.vmem_to_hbm [thread:$0]  %s319_s6, 256, %s660_s4, [#allocation4], %s484_s27, %s484_s27, %s485_s28  }
 0x297   :  { %480 = dma.done.wait [#allocation4], 256  }
 0x298   :  { %481 = vsyncadd [#allocation4], 4294967040 }
 0x299   :  { %328 = vsyncpa [#allocation3], 1 }
 0x29a   :  { %329 = vsyncpa [#allocation6], 1 }
 0x29b   :  { %330 = vsyncpa [#allocation4], 1 }

</bundles_post_ra>
